<compile_context>
chip_gen: v7x
topology: tpu7x:2x2x1
jax: 0.10.0
libtpu: 0.0.40
codegen_flags: <defaults>
</compile_context>

<pallas_src>
import functools
import math

import jax
import jax.numpy as jnp
from jax import lax
from jax.experimental import pallas as pl
from jax.experimental.pallas import tpu as pltpu

_VMEM_LIMIT = 32 * 1024 * 1024   # safe on v5e/v6e (128 MiB phys) and v7x (64 MiB phys)
_NEG_INF = -1e30                 # finite mask value: exp(-1e30 - m) underflows to 0.0


def _pick_tile(dim, preferred, aligns):
    """Largest divisor of `dim` that is a multiple of one of `aligns` (tried in
    order) and <= preferred; falls back to the full dim (always layout-legal)."""
    if dim <= preferred:
        return dim
    for align in aligns:
        t = (preferred // align) * align
        while t >= align:
            if dim % t == 0:
                return t
            t -= align
    # TODO(synk): ragged dims should use a cdiv grid + in-kernel edge masking
    # instead of this full-dim fallback (can inflate VMEM for huge prime dims).
    return dim


# ---------------------------------------------------------------------------
# Tiled matmul:  out[M, N] = x[M, K] @ w[N, K]^T (+ bias)   (nn.Linear layout)
# ---------------------------------------------------------------------------
def _matmul_kernel(x_ref, w_ref, o_ref, acc_ref):
    @pl.when(pl.program_id(2) == 0)
    def _init():
        acc_ref[...] = jnp.zeros(acc_ref.shape, jnp.float32)

    # Native-dtype operands into the MXU, f32 accumulate; contraction on K for
    # both operands — weight is NOT transposed in HBM.
    acc_ref[...] += lax.dot_general(
        x_ref[...], w_ref[...], (((1,), (1,)), ((), ())),
        preferred_element_type=jnp.float32)

    @pl.when(pl.program_id(2) == pl.num_programs(2) - 1)
    def _done():
        o_ref[...] = acc_ref[...].astype(o_ref.dtype)


def _matmul_bias_kernel(x_ref, w_ref, b_ref, o_ref, acc_ref):
    @pl.when(pl.program_id(2) == 0)
    def _init():
        acc_ref[...] = jnp.zeros(acc_ref.shape, jnp.float32)

    acc_ref[...] += lax.dot_general(
        x_ref[...], w_ref[...], (((1,), (1,)), ((), ())),
        preferred_element_type=jnp.float32)

    @pl.when(pl.program_id(2) == pl.num_programs(2) - 1)
    def _done():
        o_ref[...] = (acc_ref[...] + b_ref[...].astype(jnp.float32)).astype(o_ref.dtype)


def linear(x2, weight, bias, *, tm=512, tn=512, tk=512):
    """x2: (M, K); weight: (N, K) PyTorch Linear layout; bias: (N,) or None."""
    M, K = x2.shape
    N, K2 = weight.shape
    assert K == K2

    tm = _pick_tile(M, tm, (128, 8))   # sublane dim: 8-aligned OK
    tn = _pick_tile(N, tn, (128,))     # lane dim of out / sublane of w
    tk = _pick_tile(K, tk, (128,))     # lane dim of x and w
    grid = (M // tm, N // tn, K // tk)

    x_spec = pl.BlockSpec((tm, tk), lambda i, j, k: (i, k))
    w_spec = pl.BlockSpec((tn, tk), lambda i, j, k: (j, k))   # (N, K) layout kept
    o_spec = pl.BlockSpec((tm, tn), lambda i, j, k: (i, j))
    scratch = [pltpu.VMEM((tm, tn), jnp.float32)]

    itemsize = x2.dtype.itemsize
    cost = pl.CostEstimate(
        flops=2 * M * N * K + (M * N if bias is not None else 0),
        transcendentals=0,
        bytes_accessed=(M * K + N * K + M * N) * itemsize)
    cparams = pltpu.CompilerParams(
        dimension_semantics=("parallel", "parallel", "arbitrary"),
        vmem_limit_bytes=_VMEM_LIMIT)

    if bias is not None:
        b2 = bias.reshape(1, N)
        b_spec = pl.BlockSpec((1, tn), lambda i, j, k: (0, j))
        return pl.pallas_call(
            _matmul_bias_kernel,
            out_shape=jax.ShapeDtypeStruct((M, N), x2.dtype),
            grid=grid,
            in_specs=[x_spec, w_spec, b_spec],
            out_specs=o_spec,
            scratch_shapes=scratch,
            compiler_params=cparams,
            cost_estimate=cost,
        )(x2, weight, b2)

    return pl.pallas_call(
        _matmul_kernel,
        out_shape=jax.ShapeDtypeStruct((M, N), x2.dtype),
        grid=grid,
        in_specs=[x_spec, w_spec],
        out_specs=o_spec,
        scratch_shapes=scratch,
        compiler_params=cparams,
        cost_estimate=cost,
    )(x2, weight)


# ---------------------------------------------------------------------------
# Flash-attention over the packed QKV activation (B, T, 3C) -> (B, T, C).
# Grid = (B, Tq blocks, Tkv blocks); per-head online softmax in VMEM scratch.
# ---------------------------------------------------------------------------
def _attn_body(q_ref, k_ref, v_ref, o_ref, m_sc, l_sc, acc_sc, *,
               n_head, hs, sm_scale, k_col0, v_col0):
    qi = pl.program_id(1)
    ki = pl.program_id(2)

    @pl.when(ki == 0)
    def _init():
        m_sc[...] = jnp.full(m_sc.shape, _NEG_INF, jnp.float32)
        l_sc[...] = jnp.zeros(l_sc.shape, jnp.float32)
        acc_sc[...] = jnp.zeros(acc_sc.shape, jnp.float32)

    def process(masked):
        # TODO(synk): for hs < 128 the per-head MXU contraction is underfilled;
        # true head-packing (block-diagonal QK^T) left for a future revision.
        for h in range(n_head):
            q = q_ref[:, h * hs:(h + 1) * hs]                       # native dtype
            k = k_ref[:, k_col0 + h * hs:k_col0 + (h + 1) * hs]
            v = v_ref[:, v_col0 + h * hs:v_col0 + (h + 1) * hs]
            # QK^T on the native dtype (bf16 stays bf16), f32 accumulate.
            s = lax.dot_general(q, k, (((1,), (1,)), ((), ())),
                                preferred_element_type=jnp.float32) * sm_scale
            if masked:  # diagonal block only; off-diagonal blocks skip iota/select
                rows = lax.broadcasted_iota(jnp.int32, s.shape, 0)
                cols = lax.broadcasted_iota(jnp.int32, s.shape, 1)
                s = jnp.where(rows >= cols, s, _NEG_INF)
            m_prev = m_sc[h]                                        # (blk, 1)
            m_new = jnp.maximum(m_prev, s.max(axis=-1, keepdims=True))
            alpha = jnp.exp(m_prev - m_new)
            p = jnp.exp(s - m_new)
            l_sc[h] = alpha * l_sc[h] + p.sum(axis=-1, keepdims=True)
            acc_sc[:, h * hs:(h + 1) * hs] = (
                alpha * acc_sc[:, h * hs:(h + 1) * hs]
                + lax.dot_general(p.astype(v.dtype), v, (((1,), (0,)), ((), ())),
                                  preferred_element_type=jnp.float32))
            m_sc[h] = m_new

    @pl.when(ki < qi)        # fully-unmasked past block
    def _off_diag():
        process(masked=False)

    @pl.when(ki == qi)       # diagonal block: apply the causal mask
    def _diag():
        process(masked=True)

    # ki > qi: fully masked — no compute, and its K/V DMA is elided by the
    # clamped index_map (block min(ki, qi) is already resident).

    @pl.when(ki == pl.num_programs(2) - 1)
    def _finish():
        outs = []
        for h in range(n_head):
            inv = pl.reciprocal(l_sc[h], approx=True)   # EUP, ~free
            outs.append(acc_sc[:, h * hs:(h + 1) * hs] * inv)
        o_ref[...] = jnp.concatenate(outs, axis=-1).astype(o_ref.dtype)  # one dense store


def _attn_kernel_split(q_ref, k_ref, v_ref, o_ref, m_sc, l_sc, acc_sc, *,
                       n_head, hs, sm_scale):
    _attn_body(q_ref, k_ref, v_ref, o_ref, m_sc, l_sc, acc_sc,
               n_head=n_head, hs=hs, sm_scale=sm_scale, k_col0=0, v_col0=0)


def _attn_kernel_fused(q_ref, kv_ref, o_ref, m_sc, l_sc, acc_sc, *,
                       n_head, hs, sm_scale):
    C = n_head * hs
    _attn_body(q_ref, kv_ref, kv_ref, o_ref, m_sc, l_sc, acc_sc,
               n_head=n_head, hs=hs, sm_scale=sm_scale, k_col0=C, v_col0=2 * C)


def causal_attention_qkv(qkv, n_head, *, block=256):
    """qkv: (B, T, 3C) packed [q | k | v] along the last dim -> y: (B, T, C)."""
    B, T, threeC = qkv.shape
    C = threeC // 3
    hs = C // n_head
    sm_scale = 1.0 / math.sqrt(hs)

    blk = _pick_tile(T, block, (128, 8))   # block_q == block_k (needed by the
    nt = T // blk                          # clamped kv map + diag-only masking)
    grid = (B, nt, nt)

    itemsize = qkv.dtype.itemsize
    cost = pl.CostEstimate(
        flops=2 * B * n_head * T * T * hs,          # ~causal half of 4*B*nh*T^2*hs
        transcendentals=B * n_head * T * T // 2,    # exp
        bytes_accessed=(3 * B * T * C + B * T * C) * itemsize)
    cparams = pltpu.CompilerParams(
        dimension_semantics=("parallel", "parallel", "arbitrary"),
        vmem_limit_bytes=_VMEM_LIMIT)

    scratch = [
        pltpu.VMEM((n_head, blk, 1), jnp.float32),   # running max per head
        pltpu.VMEM((n_head, blk, 1), jnp.float32),   # running denom per head
        pltpu.VMEM((blk, C), jnp.float32),           # output accumulator (all heads)
    ]
    o_spec = pl.BlockSpec((None, blk, C), lambda b, qi, ki: (b, qi, 0))
    out_shape = jax.ShapeDtypeStruct((B, T, C), qkv.dtype)

    if C % 128 == 0:
        # Lane-legal width-C column blocks sliced straight out of packed qkv:
        # no head-split transposes, no wasted columns; kv index clamped so
        # causally-skipped blocks reuse the resident block (DMA elided).
        q_spec = pl.BlockSpec((None, blk, C), lambda b, qi, ki: (b, qi, 0))
        k_spec = pl.BlockSpec((None, blk, C),
                              lambda b, qi, ki: (b, jnp.minimum(ki, qi), 1))
        v_spec = pl.BlockSpec((None, blk, C),
                              lambda b, qi, ki: (b, jnp.minimum(ki, qi), 2))
        kernel = functools.partial(_attn_kernel_split,
                                   n_head=n_head, hs=hs, sm_scale=sm_scale)
        return pl.pallas_call(
            kernel, out_shape=out_shape, grid=grid,
            in_specs=[q_spec, k_spec, v_spec], out_specs=o_spec,
            scratch_shapes=scratch, compiler_params=cparams, cost_estimate=cost,
        )(qkv, qkv, qkv)

    # Fallback when C is not a multiple of 128: full-width (3C) row blocks are
    # always layout-legal; q/k/v and head slicing happen inside the kernel.
    qrow_spec = pl.BlockSpec((None, blk, threeC), lambda b, qi, ki: (b, qi, 0))
    kvrow_spec = pl.BlockSpec((None, blk, threeC),
                              lambda b, qi, ki: (b, jnp.minimum(ki, qi), 0))
    kernel = functools.partial(_attn_kernel_fused,
                               n_head=n_head, hs=hs, sm_scale=sm_scale)
    return pl.pallas_call(
        kernel, out_shape=out_shape, grid=grid,
        in_specs=[qrow_spec, kvrow_spec], out_specs=o_spec,
        scratch_shapes=scratch, compiler_params=cparams, cost_estimate=cost,
    )(qkv, qkv)


# ---------------------------------------------------------------------------
# Full CausalSelfAttention forward.
# ---------------------------------------------------------------------------
def causal_self_attention(x, w_attn, b_attn, w_proj, b_proj, n_head):
    """x: (B, T, C); w_attn: (3C, C); w_proj: (C, C); biases optional."""
    B, T, C = x.shape
    assert C % n_head == 0

    qkv = linear(x.reshape(B * T, C), w_attn, b_attn)               # (B*T, 3C)
    # Reshapes below are metadata-only views (no HBM traffic).
    y = causal_attention_qkv(qkv.reshape(B, T, 3 * C), n_head)      # (B, T, C)
    out = linear(y.reshape(B * T, C), w_proj, b_proj)               # (B*T, C)

    # attn_dropout / resid_dropout are identity at inference.
    # TODO(synk): training-mode dropout (in-kernel RNG masks) not implemented.
    return out.reshape(B, T, C)


# ---------------------------------------------------------------------------
# Pure-JAX reference for verification.
# ---------------------------------------------------------------------------
def _reference(x, w_attn, b_attn, w_proj, b_proj, n_head):
    B, T, C = x.shape
    hs = C // n_head
    qkv = x @ w_attn.T
    if b_attn is not None:
        qkv = qkv + b_attn
    q, k, v = jnp.split(qkv, 3, axis=-1)
    q = q.reshape(B, T, n_head, hs).transpose(0, 2, 1, 3)
    k = k.reshape(B, T, n_head, hs).transpose(0, 2, 1, 3)
    v = v.reshape(B, T, n_head, hs).transpose(0, 2, 1, 3)
    att = (q @ jnp.swapaxes(k, -1, -2)) / jnp.sqrt(jnp.float32(hs))
    mask = jnp.tril(jnp.ones((T, T), dtype=bool))
    att = jnp.where(mask[None, None], att, -jnp.inf)
    att = jax.nn.softmax(att, axis=-1)
    y = (att @ v).transpose(0, 2, 1, 3).reshape(B, T, C)
    y = y @ w_proj.T
    if b_proj is not None:
        y = y + b_proj
    return y


if __name__ == "__main__":
    def make_params(key, C, bias, dtype=jnp.float32):
        k1, k2, k3, k4 = jax.random.split(key, 4)
        w_attn = (0.02 * jax.random.normal(k1, (3 * C, C))).astype(dtype)
        b_attn = (0.02 * jax.random.normal(k2, (3 * C,))).astype(dtype) if bias else None
        w_proj = (0.02 * jax.random.normal(k3, (C, C))).astype(dtype)
        b_proj = (0.02 * jax.random.normal(k4, (C,))).astype(dtype) if bias else None
        return w_attn, b_attn, w_proj, b_proj

    key = jax.random.PRNGKey(0)

    # Test 1: C multiple of 128 (lane-dense column-split attention path), bias=True.
    B, T, C, n_head = 2, 128, 128, 2
    k0, kp = jax.random.split(key)
    x = jax.random.normal(k0, (B, T, C), dtype=jnp.float32)
    w_attn, b_attn, w_proj, b_proj = make_params(kp, C, bias=True)
    out = jax.block_until_ready(
        causal_self_attention(x, w_attn, b_attn, w_proj, b_proj, n_head))
    ref = _reference(x, w_attn, b_attn, w_proj, b_proj, n_head)
    assert out.shape == (B, T, C)
    assert jnp.allclose(out, ref, atol=2e-3, rtol=1e-2), float(
        jnp.max(jnp.abs(out - ref)))

    # Test 2: C not a multiple of 128 (full-width fallback path), bias=False.
    B2, T2, C2, nh2 = 1, 16, 64, 4
    k0b, kpb = jax.random.split(jax.random.PRNGKey(1))
    x2 = jax.random.normal(k0b, (B2, T2, C2), dtype=jnp.float32)
    w_attn2, _, w_proj2, _ = make_params(kpb, C2, bias=False)
    out2 = jax.block_until_ready(
        causal_self_attention(x2, w_attn2, None, w_proj2, None, nh2))
    ref2 = _reference(x2, w_attn2, None, w_proj2, None, nh2)
    assert out2.shape == (B2, T2, C2)
    assert jnp.allclose(out2, ref2, atol=2e-3, rtol=1e-2), float(
        jnp.max(jnp.abs(out2 - ref2)))

    # Test 3: bf16 activations/weights stay bf16 into the MXU (f32 accumulate).
    xb = x.astype(jnp.bfloat16)
    wab, bab = w_attn.astype(jnp.bfloat16), b_attn.astype(jnp.bfloat16)
    wpb, bpb = w_proj.astype(jnp.bfloat16), b_proj.astype(jnp.bfloat16)
    outb = jax.block_until_ready(
        causal_self_attention(xb, wab, bab, wpb, bpb, n_head))
    assert outb.shape == (B, T, C) and outb.dtype == jnp.bfloat16
    assert bool(jnp.all(jnp.isfinite(outb.astype(jnp.float32))))

    print("KERNEL_OK")
</pallas_src>

<mosaic_0001>
module attributes {stable_mosaic.version = 11 : i64} {
  func.func @_matmul_bias_kernel(%arg0: i32, %arg1: i32, %arg2: i32, %arg3: memref<256x128xf32, #tpu.memory_space<vmem>>, %arg4: memref<384x128xf32, #tpu.memory_space<vmem>>, %arg5: memref<1x384xf32, #tpu.memory_space<vmem>>, %arg6: memref<256x384xf32, #tpu.memory_space<vmem>>, %arg7: memref<256x384xf32, #tpu.memory_space<vmem>>) attributes {dimension_semantics = [#tpu.dimension_semantics<parallel>, #tpu.dimension_semantics<parallel>, #tpu.dimension_semantics<arbitrary>], iteration_bounds = array<i64: 1, 1, 1>, scalar_prefetch = 0 : i64, scratch_operands = 1 : i64, tpu.core_type = #tpu.core_type<tc>, window_params = [{transform_indices = @transform_0, window_bounds = array<i64: 256, 128>}, {transform_indices = @transform_1, window_bounds = array<i64: 384, 128>}, {transform_indices = @transform_2, window_bounds = array<i64: 1, 384>}, {transform_indices = @transform_3, window_bounds = array<i64: 256, 384>}]} {
    %c0_i32 = arith.constant 0 : i32
    %0 = arith.cmpi eq, %arg2, %c0_i32 : i32
    %1 = arith.extui %0 : i1 to i32
    %c0_i32_0 = arith.constant 0 : i32
    %2 = arith.cmpi ne, %1, %c0_i32_0 : i32
    scf.if %2 {
      %cst_10 = arith.constant 0.000000e+00 : f32
      %12 = vector.broadcast %cst_10 : f32 to vector<256x384xf32>
      %c0_11 = arith.constant 0 : index
      %c0_12 = arith.constant 0 : index
      %13 = vector.load %arg7[%c0_11, %c0_12] : memref<256x384xf32, #tpu.memory_space<vmem>>, vector<256x384xf32>
      tpu.vector_store %arg7[%c0_11, %c0_12], %12 {strides = array<i32>} : memref<256x384xf32, #tpu.memory_space<vmem>>, vector<256x384xf32>,
    } else {
    }
    %c0 = arith.constant 0 : index
    %c0_1 = arith.constant 0 : index
    %3 = vector.load %arg7[%c0, %c0_1] : memref<256x384xf32, #tpu.memory_space<vmem>>, vector<256x384xf32>
    %c0_2 = arith.constant 0 : index
    %c0_3 = arith.constant 0 : index
    %4 = vector.load %arg3[%c0_2, %c0_3] : memref<256x128xf32, #tpu.memory_space<vmem>>, vector<256x128xf32>
    %c0_4 = arith.constant 0 : index
    %c0_5 = arith.constant 0 : index
    %5 = vector.load %arg4[%c0_4, %c0_5] : memref<384x128xf32, #tpu.memory_space<vmem>>, vector<384x128xf32>
    %cst = arith.constant dense<0.000000e+00> : vector<256x384xf32>
    %6 = tpu.matmul %4, %5, %cst {dimension_numbers = #tpu.dot_dimension_numbers<[1], [1], [0], [0], [0, 0, 1, 0], [], []>} : vector<256x128xf32>, vector<384x128xf32>, vector<256x384xf32> -> vector<256x384xf32>
    %7 = arith.addf %3, %6 : vector<256x384xf32>
    %c0_6 = arith.constant 0 : index
    %c0_7 = arith.constant 0 : index
    %8 = vector.load %arg7[%c0_6, %c0_7] : memref<256x384xf32, #tpu.memory_space<vmem>>, vector<256x384xf32>
    tpu.vector_store %arg7[%c0_6, %c0_7], %7 {strides = array<i32>} : memref<256x384xf32, #tpu.memory_space<vmem>>, vector<256x384xf32>,
    %c0_i32_8 = arith.constant 0 : i32
    %9 = arith.cmpi eq, %arg2, %c0_i32_8 : i32
    %10 = arith.extui %9 : i1 to i32
    %c0_i32_9 = arith.constant 0 : i32
    %11 = arith.cmpi ne, %10, %c0_i32_9 : i32
    scf.if %11 {
      %c0_10 = arith.constant 0 : index
      %c0_11 = arith.constant 0 : index
      %12 = vector.load %arg7[%c0_10, %c0_11] : memref<256x384xf32, #tpu.memory_space<vmem>>, vector<256x384xf32>
      %c0_12 = arith.constant 0 : index
      %c0_13 = arith.constant 0 : index
      %13 = vector.load %arg5[%c0_12, %c0_13] : memref<1x384xf32, #tpu.memory_space<vmem>>, vector<1x384xf32>
      %14 = vector.broadcast %13 : vector<1x384xf32> to vector<256x384xf32>
      %15 = arith.addf %12, %14 : vector<256x384xf32>
      %c0_14 = arith.constant 0 : index
      %c0_15 = arith.constant 0 : index
      %16 = vector.load %arg6[%c0_14, %c0_15] : memref<256x384xf32, #tpu.memory_space<vmem>>, vector<256x384xf32>
      tpu.vector_store %arg6[%c0_14, %c0_15], %15 {strides = array<i32>} : memref<256x384xf32, #tpu.memory_space<vmem>>, vector<256x384xf32>,
    } else {
    }
    return
  }
  func.func @transform_0(%arg0: i32, %arg1: i32, %arg2: i32) -> (i32, i32) {
    %c0_i32 = arith.constant 0 : i32
    return %arg0, %arg2 : i32, i32
  }
  func.func @transform_1(%arg0: i32, %arg1: i32, %arg2: i32) -> (i32, i32) {
    %c0_i32 = arith.constant 0 : i32
    return %arg1, %arg2 : i32, i32
  }
  func.func @transform_2(%arg0: i32, %arg1: i32, %arg2: i32) -> (i32, i32) {
    %c0_i32 = arith.constant 0 : i32
    %c0_i32_0 = arith.constant 0 : i32
    return %c0_i32, %arg1 : i32, i32
  }
  func.func @transform_3(%arg0: i32, %arg1: i32, %arg2: i32) -> (i32, i32) {
    %c0_i32 = arith.constant 0 : i32
    return %arg0, %arg1 : i32, i32
  }
}

</mosaic_0001>

<bundles_post_ra>
// kernel: tpu_custom_call.1
= control target key start
LH: loop header
LB: loop body
LE: loop exit
PB: predicated region body
PF: predicated region fallthrough
CT: control target
= control target key end

     0   :  { %8 = vsyncpa [#allocation4], 0  ;;  %s1859_s0 = inlined_call_operand.hbm [shape: f32[256,128], index: 0, kind: input, shape index: {}]   ;;  %s1860_s1 = inlined_call_operand.hbm [shape: f32[384,128], index: 1, kind: input, shape index: {}]   ;;  %s1861_s2 = inlined_call_operand.vmem [shape: f32[1,384], index: 2, kind: input, shape index: {}]   ;;  %s1862_s3 = inlined_call_operand.hbm [shape: f32[256,384], index: 3, kind: output, shape index: {}]  }
   0x1   :  { %9 = vsyncpa [#allocation7], 0 }
   0x2   :  { %10 = vsyncpa [#allocation5], 0  ;;  %s1686_s12 = smov [#allocation3]   ;;  %s1614_s16 = scalar_lea.hbm %s1859_s0, 4096 }
   0x3   :  { %s16_s13 = sshll.u32 %s1686_s12, 4  ;;  %p1615_p0 = scmp.ne.s32.totalorder %s1859_s0, %s1614_s16  ;;  %s17_s13 = int_to_ptr.vmem [resolvable:$true] %s16_s13 }
   0x4   :  { %p1618_p1 = scmp.lt.u32.totalorder %s1614_s16, %s1859_s0 }
   0x6   :  { %p1620_p2 = pnand %p1618_p1, %p1615_p0 }
   0x8   :  { %1623 = shalt.err (!%p1620_p2)
}
   0x9   :  { %s1624_s21 = scalar_lea.vmem %s17_s13, 4096  ;;  %p1629_p4 = scmp.lt.s32.totalorder %s17_s13, %s17_s13 }
   0xa   :  { %p1625_p3 = scmp.ne.s32.totalorder %s17_s13, %s1624_s21  ;;  %p1630_p5 = scmp.lt.s32.totalorder %s1624_s21, %s1624_s21 }
   0xc   :  { %p1631_p6 = por %p1630_p5, %p1629_p4 }
   0xe   :  { %p1632_p7 = pnand %p1631_p6, %p1625_p3 }
  0x10   :  { %1635 = shalt.err (!%p1632_p7)
}
  0x11   :  { %s1687_s22 = smov 128   ;;  %s1688_s23 = smov 8  }
  0x12   :  { %22 = dma.hbm_to_vmem [thread:$0]  %s1859_s0, 4096, %s17_s13, [#allocation4], %s1687_s22, %s1687_s22, %s1688_s23  }
  0x13   :  { %s1689_s26 = smov [#allocation6]   ;;  %s1636_s30 = scalar_lea.hbm %s1860_s1, 6144 }
  0x14   :  { %s28_s27 = sshll.u32 %s1689_s26, 4  ;;  %p1637_p8 = scmp.ne.s32.totalorder %s1860_s1, %s1636_s30  ;;  %s29_s27 = int_to_ptr.vmem [resolvable:$true] %s28_s27 }
  0x15   :  { %p1640_p9 = scmp.lt.u32.totalorder %s1636_s30, %s1860_s1 }
  0x17   :  { %p1642_p10 = pnand %p1640_p9, %p1637_p8 }
  0x19   :  { %1645 = shalt.err (!%p1642_p10)
}
  0x1a   :  { %s1646_s8 = scalar_lea.vmem %s29_s27, 6144  ;;  %p1651_p12 = scmp.lt.s32.totalorder %s29_s27, %s29_s27 }
  0x1b   :  { %p1647_p11 = scmp.ne.s32.totalorder %s29_s27, %s1646_s8  ;;  %p1652_p13 = scmp.lt.s32.totalorder %s1646_s8, %s1646_s8 }
  0x1d   :  { %p1653_p0 = por %p1652_p13, %p1651_p12 }
  0x1f   :  { %p1654_p1 = pnand %p1653_p0, %p1647_p11 }
  0x21   :  { %1657 = shalt.err (!%p1654_p1)
}
  0x22   :  { %34 = dma.hbm_to_vmem [thread:$0]  %s1860_s1, 6144, %s29_s27, [#allocation7], %s1687_s22, %s1687_s22, %s1688_s23  }
  0x23   :  { %1680 = dma.done.wait [#allocation4], 4096  }
  0x24   :  { %1681 = vsyncadd [#allocation4], 4294963200 }
  0x25   :  { %1682 = dma.done.wait [#allocation7], 6144  }
  0x26   :  { %1683 = vsyncadd [#allocation7], 4294961152  ;;  %v287_v0 = vld [vmem:[#allocation6 + $0x80] sm:$0xff]  ;;  %v288_v1 = vld [vmem:[#allocation6 + $0x88] sm:$0xff] }
  0x27   :  { %v271_v2 = vld [vmem:[#allocation6] sm:$0xff]  ;;  %v1543_v3 = vpack.c.bf16 %v288_v1, %v287_v0  ;;  %v272_v4 = vld [vmem:[#allocation6 + $0x8] sm:$0xff]  ;;  %v289_v5 = vld [vmem:[#allocation6 + $0x90] sm:$0xff] }
  0x28   :  { %v290_v6 = vld [vmem:[#allocation6 + $0x98] sm:$0xff]  ;;  %v1545_v7 = vpack.c.bf16 %v272_v4, %v271_v2  ;;  %v273_v9 = vld [vmem:[#allocation6 + $0x10] sm:$0xff]  ;;  %v291_v11 = vld [vmem:[#allocation6 + $0xa0] sm:$0xff] }
  0x29   :  { %v1547_v8 = vpack.c.bf16 %v290_v6, %v289_v5  ;;  %1544 = vmatprep.subr.bf16.mxu0 %v1543_v3  ;;  %v274_v10 = vld [vmem:[#allocation6 + $0x18] sm:$0xff]  ;;  %v292_v12 = vld [vmem:[#allocation6 + $0xa8] sm:$0xff]  ;;  %v1737_v15 = vld [vmem:[#allocation3] sm:$0xff] }
  0x2a   :  { %1546 = vmatpush3.bf16.xpose.msra.mxu0 %v1545_v7  ;;  %v1549_v13 = vpack.c.bf16 %v274_v10, %v273_v9  ;;  %v1551_v14 = vpack.c.bf16 %v292_v12, %v291_v11  ;;  %1351 = vmatprep.mubr.f32.mxu0 %v1737_v15  ;;  %v303_v16 = vld [vmem:[#allocation6 + $0x100] sm:$0xff]  ;;  %v304_v17 = vld [vmem:[#allocation6 + $0x108] sm:$0xff]  ;;  %v305_v19 = vld [vmem:[#allocation6 + $0x110] sm:$0xff] }
  0x2b   :  { %1548 = vmatprep.subr.bf16.mxu0 %v1547_v8  ;;  %1495 = vmatprep.mubr.f32.mxu1 %v1737_v15  ;;  %v1575_v18 = vpack.c.bf16 %v304_v17, %v303_v16  ;;  %v306_v20 = vld [vmem:[#allocation6 + $0x118] sm:$0xff]  ;;  %v275_v21 = vld [vmem:[#allocation6 + $0x20] sm:$0xff]  ;;  %v276_v22 = vld [vmem:[#allocation6 + $0x28] sm:$0xff] }
  0x2c   :  { %v1579_v23 = vpack.c.bf16 %v306_v20, %v305_v19  ;;  %v293_v24 = vld [vmem:[#allocation6 + $0xb0] sm:$0xff]  ;;  %v294_v25 = vld [vmem:[#allocation6 + $0xb8] sm:$0xff]  ;;  %v1553_v26 = vpack.c.bf16 %v276_v22, %v275_v21  ;;  %v307_v28 = vld [vmem:[#allocation6 + $0x120] sm:$0xff] }
  0x2d   :  { %1576 = vmatprep.subr.bf16.mxu1 %v1575_v18  ;;  %v1555_v27 = vpack.c.bf16 %v294_v25, %v293_v24  ;;  %v308_v29 = vld [vmem:[#allocation6 + $0x128] sm:$0xff]  ;;  %v277_v31 = vld [vmem:[#allocation6 + $0x30] sm:$0xff]  ;;  %v278_v32 = vld [vmem:[#allocation6 + $0x38] sm:$0xff] }
  0x2e   :  { %1578 = vmatpush3.bf16.xpose.msra.mxu1 %v1575_v18  ;;  %v1583_v30 = vpack.c.bf16 %v308_v29, %v307_v28  ;;  %v295_v33 = vld [vmem:[#allocation6 + $0xc0] sm:$0xff]  ;;  %v296_v34 = vld [vmem:[#allocation6 + $0xc8] sm:$0xff]  ;;  %v1557_v35 = vpack.c.bf16 %v278_v32, %v277_v31  ;;  %v309_v37 = vld [vmem:[#allocation6 + $0x130] sm:$0xff] }
  0x2f   :  { %1580 = vmatprep.subr.bf16.mxu1 %v1579_v23  ;;  %v1559_v36 = vpack.c.bf16 %v296_v34, %v295_v33  ;;  %v310_v38 = vld [vmem:[#allocation6 + $0x138] sm:$0xff]  ;;  %v279_v40 = vld [vmem:[#allocation6 + $0x40] sm:$0xff]  ;;  %v280_v41 = vld [vmem:[#allocation6 + $0x48] sm:$0xff] }
  0x30   :  { %v1587_v39 = vpack.c.bf16 %v310_v38, %v309_v37  ;;  %v297_v42 = vld [vmem:[#allocation6 + $0xd0] sm:$0xff]  ;;  %v298_v43 = vld [vmem:[#allocation6 + $0xd8] sm:$0xff]  ;;  %v1561_v44 = vpack.c.bf16 %v280_v41, %v279_v40  ;;  %v311_v46 = vld [vmem:[#allocation6 + $0x140] sm:$0xff]  ;;  %v1094_v40 = vlaneseq }
  0x31   :  { %v1563_v45 = vpack.c.bf16 %v298_v43, %v297_v42  ;;  %v312_v47 = vld [vmem:[#allocation6 + $0x148] sm:$0xff]  ;;  %v281_v49 = vld [vmem:[#allocation6 + $0x50] sm:$0xff]  ;;  %v282_v50 = vld [vmem:[#allocation6 + $0x58] sm:$0xff] }
  0x32   :  { %1550 = vmatpush3.bf16.xpose.msra.mxu0 %v1549_v13  ;;  %v1591_v48 = vpack.c.bf16 %v312_v47, %v311_v46  ;;  %v299_v51 = vld [vmem:[#allocation6 + $0xe0] sm:$0xff]  ;;  %v300_v52 = vld [vmem:[#allocation6 + $0xe8] sm:$0xff]  ;;  %v1565_v53 = vpack.c.bf16 %v282_v50, %v281_v49  ;;  %v313_v55 = vld [vmem:[#allocation6 + $0x150] sm:$0xff]  ;;  %v1095_v41 = vshrl.u32 %v1094_v40, 7 }
  0x33   :  { %1552 = vmatprep.subr.bf16.mxu0 %v1551_v14  ;;  %v1567_v54 = vpack.c.bf16 %v300_v52, %v299_v51  ;;  %v314_v56 = vld [vmem:[#allocation6 + $0x158] sm:$0xff]  ;;  %v283_v58 = vld [vmem:[#allocation6 + $0x60] sm:$0xff]  ;;  %v284_v59 = vld [vmem:[#allocation6 + $0x68] sm:$0xff] }
  0x34   :  { %v1595_v57 = vpack.c.bf16 %v314_v56, %v313_v55  ;;  %v301_v60 = vld [vmem:[#allocation6 + $0xf0] sm:$0xff]  ;;  %v302_v61 = vld [vmem:[#allocation6 + $0xf8] sm:$0xff]  ;;  %v1569_v62 = vpack.c.bf16 %v284_v59, %v283_v58  ;;  %v315_v0 = vld [vmem:[#allocation6 + $0x160] sm:$0xff]  ;;  %v1096_v42 = vsub.s32 0, %v1095_v41  ;;  %v1104_v52 = vsub.s32 2, %v1095_v41 }
  0x35   :  { %v1571_v63 = vpack.c.bf16 %v302_v61, %v301_v60  ;;  %v316_v1 = vld [vmem:[#allocation6 + $0x168] sm:$0xff]  ;;  %v285_v3 = vld [vmem:[#allocation6 + $0x70] sm:$0xff]  ;;  %v286_v4 = vld [vmem:[#allocation6 + $0x78] sm:$0xff] }
  0x36   :  { %1582 = vmatpush3.bf16.xpose.msra.mxu1 %v1579_v23  ;;  %v1599_v2 = vpack.c.bf16 %v316_v1, %v315_v0  ;;  %v1573_v5 = vpack.c.bf16 %v286_v4, %v285_v3  ;;  %v317_v6 = vld [vmem:[#allocation6 + $0x170] sm:$0xff]  ;;  %v318_v7 = vld [vmem:[#allocation6 + $0x178] sm:$0xff]  ;;  %v240_v9 = vld [vmem:[#allocation3 + $0x8] sm:$0xff] }
  0x37   :  { %1584 = vmatprep.subr.bf16.mxu1 %v1583_v30  ;;  %v1603_v8 = vpack.c.bf16 %v318_v7, %v317_v6  ;;  %v241_v10 = vld [vmem:[#allocation3 + $0x10] sm:$0xff]  ;;  %v242_v11 = vld [vmem:[#allocation3 + $0x18] sm:$0xff]  ;;  %v243_v12 = vld [vmem:[#allocation3 + $0x20] sm:$0xff] }
  0x38   :  { %v244_v13 = vld [vmem:[#allocation3 + $0x28] sm:$0xff]  ;;  %v245_v14 = vld [vmem:[#allocation3 + $0x30] sm:$0xff]  ;;  %v247_v16 = vld [vmem:[#allocation3 + $0x40] sm:$0xff] }
  0x39   :  { %v248_v17 = vld [vmem:[#allocation3 + $0x48] sm:$0xff]  ;;  %v249_v18 = vld [vmem:[#allocation3 + $0x50] sm:$0xff]  ;;  %v250_v19 = vld [vmem:[#allocation3 + $0x58] sm:$0xff] }
  0x3a   :  { %1554 = vmatpush3.bf16.xpose.msra.mxu0 %v1553_v26  ;;  %v251_v20 = vld [vmem:[#allocation3 + $0x60] sm:$0xff]  ;;  %v252_v21 = vld [vmem:[#allocation3 + $0x68] sm:$0xff]  ;;  %v253_v22 = vld [vmem:[#allocation3 + $0x70] sm:$0xff] }
  0x3b   :  { %1556 = vmatprep.subr.bf16.mxu0 %v1555_v27  ;;  %v254_v23 = vld [vmem:[#allocation3 + $0x78] sm:$0xff]  ;;  %v255_v24 = vld [vmem:[#allocation3 + $0x80] sm:$0xff]  ;;  %v256_v25 = vld [vmem:[#allocation3 + $0x88] sm:$0xff] }
  0x3c   :  { %v257_v26 = vld [vmem:[#allocation3 + $0x90] sm:$0xff]  ;;  %v258_v27 = vld [vmem:[#allocation3 + $0x98] sm:$0xff]  ;;  %v259_v28 = vld [vmem:[#allocation3 + $0xa0] sm:$0xff] }
  0x3d   :  { %v260_v29 = vld [vmem:[#allocation3 + $0xa8] sm:$0xff]  ;;  %v262_v31 = vld [vmem:[#allocation3 + $0xb8] sm:$0xff]  ;;  %v263_v32 = vld [vmem:[#allocation3 + $0xc0] sm:$0xff] }
  0x3e   :  { %1586 = vmatpush3.bf16.xpose.msra.mxu1 %v1583_v30  ;;  %v261_v30 = vld [vmem:[#allocation3 + $0xb0] sm:$0xff]  ;;  %v264_v33 = vld [vmem:[#allocation3 + $0xc8] sm:$0xff]  ;;  %v1092_v43 = vld [vmem:[%s1861_s2] sm:$0x7]  ;;  %s1690_s2 = smov [#allocation8]  }
  0x3f   :  { %1588 = vmatprep.subr.bf16.mxu1 %v1587_v39  ;;  %v265_v34 = vld [vmem:[#allocation3 + $0xd0] sm:$0xff]  ;;  %v268_v37 = vld [vmem:[#allocation3 + $0xe8] sm:$0xff]  ;;  %s1306_s11 = sshll.u32 %s1690_s2, 4  ;;  %s1307_s11 = int_to_ptr.vmem [resolvable:$true] %s1306_s11 }
  0x40   :  { %v269_v38 = vld [vmem:[#allocation3 + $0xf0] sm:$0xff]  ;;  %s1658_s12 = scalar_lea.vmem %s1307_s11, 12288  ;;  %p1663_p3 = scmp.lt.s32.totalorder %s1307_s11, %s1307_s11 }
  0x41   :  { %p1659_p2 = scmp.ne.s32.totalorder %s1307_s11, %s1658_s12  ;;  %p1664_p4 = scmp.lt.s32.totalorder %s1658_s12, %s1658_s12 }
  0x42   :  { %1558 = vmatpush3.bf16.xpose.msra.mxu0 %v1557_v35  ;;  %v266_v35 = vld [vmem:[#allocation3 + $0xd8] sm:$0xff] }
  0x43   :  { %1560 = vmatprep.subr.bf16.mxu0 %v1559_v36  ;;  %v267_v36 = vld [vmem:[#allocation3 + $0xe0] sm:$0xff]  ;;  %p1665_p5 = por %p1664_p4, %p1663_p3 }
  0x45   :  { %p1666_p6 = pnand %p1665_p5, %p1659_p2 }
  0x46   :  { %1590 = vmatpush3.bf16.xpose.msra.mxu1 %v1587_v39  ;;  %v270_v39 = vld [vmem:[#allocation3 + $0xf8] sm:$0xff] }
  0x47   :  { %1592 = vmatprep.subr.bf16.mxu1 %v1591_v48 }
  0x4a   :  { %1562 = vmatpush3.bf16.xpose.msra.mxu0 %v1561_v44  ;;  %v1100_v44 = vsub.s32 1, %v1095_v41 }
  0x4b   :  { %1564 = vmatprep.subr.bf16.mxu0 %v1563_v45  ;;  %v1745_v45 = vrot.slane %v1092_v43, %v1096_v42 }
  0x4c   :  { %v1747_v46 = vrot.slane %v1092_v43, %v1100_v44 }
  0x4e   :  { %1594 = vmatpush3.bf16.xpose.msra.mxu1 %v1591_v48 }
  0x4f   :  { %1596 = vmatprep.subr.bf16.mxu1 %v1595_v57 }
  0x52   :  { %1566 = vmatpush3.bf16.xpose.msra.mxu0 %v1565_v53 }
  0x53   :  { %1568 = vmatprep.subr.bf16.mxu0 %v1567_v54 }
  0x56   :  { %1598 = vmatpush3.bf16.xpose.msra.mxu1 %v1595_v57  ;;  %v1753_v57 = vrot.slane %v1092_v43, %v1104_v52 }
  0x57   :  { %1600 = vmatprep.subr.bf16.mxu1 %v1599_v2 }
  0x5a   :  { %1570 = vmatpush3.bf16.xpose.msra.mxu0 %v1569_v62 }
  0x5b   :  { %1572 = vmatprep.subr.bf16.mxu0 %v1571_v63 }
  0x5e   :  { %1602 = vmatpush3.bf16.xpose.msra.mxu1 %v1599_v2 }
  0x5f   :  { %1604 = vmatprep.subr.bf16.mxu1 %v1603_v8 }
  0x62   :  { %1574 = vmatpush3.bf16.xpose.msra.mxu0 %v1573_v5 }
  0x66   :  { %1606 = vmatpush3.bf16.xpose.msra.mxu1 %v1603_v8 }
  0x69   :  { %1352 = vmatmul.mubr.f32.vlgmr.msra.gmra.mrb[0].mxu0 %v1737_v15  ;;  %v246_v15 = vld [vmem:[#allocation3 + $0x38] sm:$0xff] }
  0x6a   :  { %1353 = vmatprep.mubr.f32.mxu0 %v240_v9 }
  0x6d   :  { %1354 = vmatmul.mubr.f32.gmra.mrb[2].mxu0 %v240_v9  ;;  %1496 = vmatmul.mubr.f32.vlgmr.msra.gmra.mrb[0].mxu1 %v240_v9 }
  0x6e   :  { %1355 = vmatprep.mubr.f32.mxu0 %v241_v10  ;;  %1498 = vmatprep.mubr.f32.mxu1 %v241_v10 }
  0x71   :  { %1356 = vmatmul.mubr.f32.gmra.mrb[4].mxu0 %v241_v10  ;;  %1499 = vmatmul.mubr.f32.gmra.mrb[2].mxu1 %v242_v11 }
  0x72   :  { %1357 = vmatprep.mubr.f32.mxu0 %v242_v11  ;;  %1501 = vmatprep.mubr.f32.mxu1 %v243_v12 }
  0x75   :  { %1358 = vmatmul.mubr.f32.gmra.mrb[6].mxu0 %v242_v11  ;;  %1502 = vmatmul.mubr.f32.gmra.mrb[4].mxu1 %v244_v13 }
  0x76   :  { %1359 = vmatprep.mubr.f32.mxu0 %v243_v12  ;;  %1504 = vmatprep.mubr.f32.mxu1 %v245_v14 }
  0x79   :  { %1360 = vmatmul.mubr.f32.gmra.mrb[8].mxu0 %v243_v12  ;;  %1505 = vmatmul.mubr.f32.gmra.mrb[6].mxu1 %v246_v15 }
  0x7a   :  { %1361 = vmatprep.mubr.f32.mxu0 %v244_v13  ;;  %1507 = vmatprep.mubr.f32.mxu1 %v247_v16 }
  0x7d   :  { %1362 = vmatmul.mubr.f32.gmra.mrb[10].mxu0 %v244_v13  ;;  %1508 = vmatmul.mubr.f32.gmra.mrb[8].mxu1 %v248_v17 }
  0x7e   :  { %1363 = vmatprep.mubr.f32.mxu0 %v245_v14  ;;  %1510 = vmatprep.mubr.f32.mxu1 %v249_v18 }
  0x81   :  { %1364 = vmatmul.mubr.f32.gmra.mrb[12].mxu0 %v245_v14  ;;  %1511 = vmatmul.mubr.f32.gmra.mrb[10].mxu1 %v250_v19 }
  0x82   :  { %1365 = vmatprep.mubr.f32.mxu0 %v246_v15  ;;  %1513 = vmatprep.mubr.f32.mxu1 %v251_v20 }
  0x85   :  { %1366 = vmatmul.mubr.f32.gmra.mrb[14].mxu0 %v246_v15  ;;  %1514 = vmatmul.mubr.f32.gmra.mrb[12].mxu1 %v252_v21 }
  0x86   :  { %1367 = vmatprep.mubr.f32.mxu0 %v247_v16  ;;  %1516 = vmatprep.mubr.f32.mxu1 %v253_v22 }
  0x89   :  { %1368 = vmatmul.mubr.f32.gmra.mrb[16].mxu0 %v247_v16  ;;  %1517 = vmatmul.mubr.f32.gmra.mrb[14].mxu1 %v254_v23 }
  0x8a   :  { %1369 = vmatprep.mubr.f32.mxu0 %v248_v17  ;;  %1519 = vmatprep.mubr.f32.mxu1 %v255_v24 }
  0x8d   :  { %1370 = vmatmul.mubr.f32.gmra.mrb[18].mxu0 %v248_v17  ;;  %1520 = vmatmul.mubr.f32.gmra.mrb[16].mxu1 %v256_v25 }
  0x8e   :  { %1371 = vmatprep.mubr.f32.mxu0 %v249_v18  ;;  %1522 = vmatprep.mubr.f32.mxu1 %v257_v26 }
  0x91   :  { %1372 = vmatmul.mubr.f32.gmra.mrb[20].mxu0 %v249_v18  ;;  %1523 = vmatmul.mubr.f32.gmra.mrb[18].mxu1 %v258_v27 }
  0x92   :  { %1373 = vmatprep.mubr.f32.mxu0 %v250_v19  ;;  %1525 = vmatprep.mubr.f32.mxu1 %v259_v28 }
  0x95   :  { %1374 = vmatmul.mubr.f32.gmra.mrb[22].mxu0 %v250_v19  ;;  %1526 = vmatmul.mubr.f32.gmra.mrb[20].mxu1 %v260_v29 }
  0x96   :  { %1375 = vmatprep.mubr.f32.mxu0 %v251_v20  ;;  %1528 = vmatprep.mubr.f32.mxu1 %v261_v30 }
  0x99   :  { %1376 = vmatmul.mubr.f32.gmra.mrb[24].mxu0 %v251_v20  ;;  %1529 = vmatmul.mubr.f32.gmra.mrb[22].mxu1 %v262_v31 }
  0x9a   :  { %1377 = vmatprep.mubr.f32.mxu0 %v252_v21  ;;  %1531 = vmatprep.mubr.f32.mxu1 %v263_v32 }
  0x9d   :  { %1378 = vmatmul.mubr.f32.gmra.mrb[26].mxu0 %v252_v21  ;;  %1532 = vmatmul.mubr.f32.gmra.mrb[24].mxu1 %v264_v33 }
  0x9e   :  { %1379 = vmatprep.mubr.f32.mxu0 %v253_v22  ;;  %1534 = vmatprep.mubr.f32.mxu1 %v265_v34 }
  0xa1   :  { %1380 = vmatmul.mubr.f32.gmra.mrb[28].mxu0 %v253_v22  ;;  %1535 = vmatmul.mubr.f32.gmra.mrb[26].mxu1 %v266_v35 }
  0xa2   :  { %1381 = vmatprep.mubr.f32.mxu0 %v254_v23  ;;  %1537 = vmatprep.mubr.f32.mxu1 %v267_v36 }
  0xa5   :  { %1382 = vmatmul.mubr.f32.gmra.mrb[30].mxu0 %v254_v23  ;;  %1538 = vmatmul.mubr.f32.gmra.mrb[28].mxu1 %v268_v37 }
  0xa6   :  { %1383 = vmatprep.mubr.f32.mxu0 %v255_v24  ;;  %1540 = vmatprep.mubr.f32.mxu1 %v269_v38 }
  0xa9   :  { %1384 = vmatmul.mubr.f32.gmra.mrb[32].mxu0 %v255_v24  ;;  %1541 = vmatmul.mubr.f32.gmra.mrb[30].mxu1 %v270_v39 }
  0xaa   :  { %1385 = vmatprep.mubr.f32.mxu0 %v256_v25 }
  0xad   :  { %1386 = vmatmul.mubr.f32.gmra.mrb[34].mxu0 %v256_v25 }
  0xae   :  { %1387 = vmatprep.mubr.f32.mxu0 %v257_v26 }
  0xb1   :  { %1388 = vmatmul.mubr.f32.gmra.mrb[36].mxu0 %v257_v26 }
  0xb2   :  { %1389 = vmatprep.mubr.f32.mxu0 %v258_v27 }
  0xb5   :  { %1390 = vmatmul.mubr.f32.gmra.mrb[38].mxu0 %v258_v27 }
  0xb6   :  { %1391 = vmatprep.mubr.f32.mxu0 %v259_v28 }
  0xb9   :  { %1392 = vmatmul.mubr.f32.gmra.mrb[40].mxu0 %v259_v28 }
  0xba   :  { %1393 = vmatprep.mubr.f32.mxu0 %v260_v29 }
  0xbd   :  { %1394 = vmatmul.mubr.f32.gmra.mrb[42].mxu0 %v260_v29 }
  0xbe   :  { %1395 = vmatprep.mubr.f32.mxu0 %v261_v30 }
  0xc1   :  { %1396 = vmatmul.mubr.f32.gmra.mrb[44].mxu0 %v261_v30 }
  0xc2   :  { %1397 = vmatprep.mubr.f32.mxu0 %v262_v31 }
  0xc5   :  { %1398 = vmatmul.mubr.f32.gmra.mrb[46].mxu0 %v262_v31 }
  0xc6   :  { %1399 = vmatprep.mubr.f32.mxu0 %v263_v32 }
  0xc9   :  { %1400 = vmatmul.mubr.f32.gmra.mrb[48].mxu0 %v263_v32 }
  0xca   :  { %1401 = vmatprep.mubr.f32.mxu0 %v264_v33 }
  0xcd   :  { %1402 = vmatmul.mubr.f32.gmra.mrb[50].mxu0 %v264_v33 }
  0xce   :  { %1403 = vmatprep.mubr.f32.mxu0 %v265_v34 }
  0xd1   :  { %1404 = vmatmul.mubr.f32.gmra.mrb[52].mxu0 %v265_v34 }
  0xd2   :  { %1405 = vmatprep.mubr.f32.mxu0 %v266_v35 }
  0xd5   :  { %1406 = vmatmul.mubr.f32.gmra.mrb[54].mxu0 %v266_v35 }
  0xd6   :  { %1407 = vmatprep.mubr.f32.mxu0 %v267_v36 }
  0xd9   :  { %1408 = vmatmul.mubr.f32.gmra.mrb[56].mxu0 %v267_v36 }
  0xda   :  { %1409 = vmatprep.mubr.f32.mxu0 %v268_v37 }
  0xdd   :  { %1410 = vmatmul.mubr.f32.gmra.mrb[58].mxu0 %v268_v37 }
  0xde   :  { %1411 = vmatprep.mubr.f32.mxu0 %v269_v38 }
  0xe1   :  { %1412 = vmatmul.mubr.f32.gmra.mrb[60].mxu0 %v269_v38 }
  0xe2   :  { %1413 = vmatprep.mubr.f32.mxu0 %v270_v39 }
  0xe5   :  { %1414 = vmatmul.mubr.f32.gmra.mrb[62].mxu0 %v270_v39 }
 0x13c   :  { %v385_v47 = vpop.f32.mrb[0].mxu0 }
 0x13d   :  { %v1109_v48 = vadd.f32 %v1745_v45, %v385_v47  ;;  %v387_v49 = vpop.f32.mrb[1].mxu0 }
 0x13e   :  { %v1110_v50 = vadd.f32 %v1747_v46, %v387_v49 }
 0x13f   :  { %1205 = vst [vmem:[#allocation8] sm:$0xff] %v1109_v48 }
 0x140   :  { %1206 = vst [vmem:[#allocation8 + $0x8] sm:$0xff] %v1110_v50  ;;  %v391_v51 = vpop.f32.mrb[2].mxu0  ;;  %v1497_v61 = vpop.f32.mrb[0].mxu1 }
 0x141   :  { %v1112_v53 = vadd.f32 %v1745_v45, %v391_v51  ;;  %v393_v54 = vpop.f32.mrb[3].mxu0  ;;  %v1114_v63 = vadd.f32 %v1497_v61, %v1753_v57  ;;  %v642_v0 = vpop.f32.mrb[1].mxu1 }
 0x142   :  { %v1113_v55 = vadd.f32 %v1747_v46, %v393_v54  ;;  %v1111_v3 = vadd.f32 %v1753_v57, %v642_v0 }
 0x143   :  { %1208 = vst [vmem:[#allocation8 + $0x18] sm:$0xff] %v1112_v53  ;;  %1210 = vst [vmem:[#allocation8 + $0x28] sm:$0xff] %v1114_v63 }
 0x144   :  { %1209 = vst [vmem:[#allocation8 + $0x20] sm:$0xff] %v1113_v55  ;;  %v397_v56 = vpop.f32.mrb[4].mxu0  ;;  %1207 = vst [vmem:[#allocation8 + $0x10] sm:$0xff] %v1111_v3  ;;  %v1500_v5 = vpop.f32.mrb[2].mxu1 }
 0x145   :  { %v1115_v58 = vadd.f32 %v1745_v45, %v397_v56  ;;  %v399_v59 = vpop.f32.mrb[5].mxu0  ;;  %v1120_v7 = vadd.f32 %v1500_v5, %v1753_v57  ;;  %v652_v8 = vpop.f32.mrb[3].mxu1 }
 0x146   :  { %v1116_v60 = vadd.f32 %v1747_v46, %v399_v59  ;;  %v1117_v11 = vadd.f32 %v1753_v57, %v652_v8 }
 0x147   :  { %1211 = vst [vmem:[#allocation8 + $0x30] sm:$0xff] %v1115_v58  ;;  %1216 = vst [vmem:[#allocation8 + $0x58] sm:$0xff] %v1120_v7 }
 0x148   :  { %1212 = vst [vmem:[#allocation8 + $0x38] sm:$0xff] %v1116_v60  ;;  %v403_v62 = vpop.f32.mrb[6].mxu0  ;;  %1213 = vst [vmem:[#allocation8 + $0x40] sm:$0xff] %v1117_v11  ;;  %v1503_v13 = vpop.f32.mrb[4].mxu1 }
 0x149   :  { %v1118_v1 = vadd.f32 %v1745_v45, %v403_v62  ;;  %v405_v2 = vpop.f32.mrb[7].mxu0  ;;  %v1126_v15 = vadd.f32 %v1503_v13, %v1753_v57  ;;  %v662_v16 = vpop.f32.mrb[5].mxu1 }
 0x14a   :  { %v1119_v4 = vadd.f32 %v1747_v46, %v405_v2  ;;  %v1123_v19 = vadd.f32 %v1753_v57, %v662_v16 }
 0x14b   :  { %1214 = vst [vmem:[#allocation8 + $0x48] sm:$0xff] %v1118_v1  ;;  %1222 = vst [vmem:[#allocation8 + $0x88] sm:$0xff] %v1126_v15 }
 0x14c   :  { %1215 = vst [vmem:[#allocation8 + $0x50] sm:$0xff] %v1119_v4  ;;  %v409_v6 = vpop.f32.mrb[8].mxu0  ;;  %1219 = vst [vmem:[#allocation8 + $0x70] sm:$0xff] %v1123_v19  ;;  %v1506_v21 = vpop.f32.mrb[6].mxu1 }
 0x14d   :  { %v1121_v9 = vadd.f32 %v1745_v45, %v409_v6  ;;  %v411_v10 = vpop.f32.mrb[9].mxu0  ;;  %v1132_v23 = vadd.f32 %v1506_v21, %v1753_v57  ;;  %v672_v24 = vpop.f32.mrb[7].mxu1 }
 0x14e   :  { %v1122_v12 = vadd.f32 %v1747_v46, %v411_v10  ;;  %v1129_v27 = vadd.f32 %v1753_v57, %v672_v24 }
 0x14f   :  { %1217 = vst [vmem:[#allocation8 + $0x60] sm:$0xff] %v1121_v9  ;;  %1228 = vst [vmem:[#allocation8 + $0xb8] sm:$0xff] %v1132_v23 }
 0x150   :  { %1218 = vst [vmem:[#allocation8 + $0x68] sm:$0xff] %v1122_v12  ;;  %v415_v14 = vpop.f32.mrb[10].mxu0  ;;  %1225 = vst [vmem:[#allocation8 + $0xa0] sm:$0xff] %v1129_v27  ;;  %v1509_v29 = vpop.f32.mrb[8].mxu1 }
 0x151   :  { %v1124_v17 = vadd.f32 %v1745_v45, %v415_v14  ;;  %v417_v18 = vpop.f32.mrb[11].mxu0  ;;  %v1138_v31 = vadd.f32 %v1509_v29, %v1753_v57  ;;  %v682_v32 = vpop.f32.mrb[9].mxu1 }
 0x152   :  { %v1125_v20 = vadd.f32 %v1747_v46, %v417_v18  ;;  %v1135_v35 = vadd.f32 %v1753_v57, %v682_v32 }
 0x153   :  { %1220 = vst [vmem:[#allocation8 + $0x78] sm:$0xff] %v1124_v17  ;;  %1234 = vst [vmem:[#allocation8 + $0xe8] sm:$0xff] %v1138_v31 }
 0x154   :  { %1221 = vst [vmem:[#allocation8 + $0x80] sm:$0xff] %v1125_v20  ;;  %v421_v22 = vpop.f32.mrb[12].mxu0  ;;  %1231 = vst [vmem:[#allocation8 + $0xd0] sm:$0xff] %v1135_v35  ;;  %v1512_v37 = vpop.f32.mrb[10].mxu1 }
 0x155   :  { %v1127_v25 = vadd.f32 %v1745_v45, %v421_v22  ;;  %v423_v26 = vpop.f32.mrb[13].mxu0  ;;  %v1144_v39 = vadd.f32 %v1512_v37, %v1753_v57  ;;  %v692_v40 = vpop.f32.mrb[11].mxu1 }
 0x156   :  { %v1128_v28 = vadd.f32 %v1747_v46, %v423_v26  ;;  %v1141_v43 = vadd.f32 %v1753_v57, %v692_v40 }
 0x157   :  { %1223 = vst [vmem:[#allocation8 + $0x90] sm:$0xff] %v1127_v25  ;;  %1240 = vst [vmem:[#allocation8 + $0x118] sm:$0xff] %v1144_v39 }
 0x158   :  { %1224 = vst [vmem:[#allocation8 + $0x98] sm:$0xff] %v1128_v28  ;;  %v427_v30 = vpop.f32.mrb[14].mxu0  ;;  %1237 = vst [vmem:[#allocation8 + $0x100] sm:$0xff] %v1141_v43  ;;  %v1515_v47 = vpop.f32.mrb[12].mxu1 }
 0x159   :  { %v1130_v33 = vadd.f32 %v1745_v45, %v427_v30  ;;  %v429_v34 = vpop.f32.mrb[15].mxu0  ;;  %v1150_v49 = vadd.f32 %v1515_v47, %v1753_v57  ;;  %v702_v50 = vpop.f32.mrb[13].mxu1 }
 0x15a   :  { %v1131_v36 = vadd.f32 %v1747_v46, %v429_v34  ;;  %v1147_v53 = vadd.f32 %v1753_v57, %v702_v50 }
 0x15b   :  { %1226 = vst [vmem:[#allocation8 + $0xa8] sm:$0xff] %v1130_v33  ;;  %1246 = vst [vmem:[#allocation8 + $0x148] sm:$0xff] %v1150_v49 }
 0x15c   :  { %1227 = vst [vmem:[#allocation8 + $0xb0] sm:$0xff] %v1131_v36  ;;  %v433_v38 = vpop.f32.mrb[16].mxu0  ;;  %1243 = vst [vmem:[#allocation8 + $0x130] sm:$0xff] %v1147_v53  ;;  %v1518_v55 = vpop.f32.mrb[14].mxu1 }
 0x15d   :  { %v1133_v41 = vadd.f32 %v1745_v45, %v433_v38  ;;  %v435_v42 = vpop.f32.mrb[17].mxu0  ;;  %v1156_v58 = vadd.f32 %v1518_v55, %v1753_v57  ;;  %v712_v59 = vpop.f32.mrb[15].mxu1 }
 0x15e   :  { %v1134_v44 = vadd.f32 %v1747_v46, %v435_v42  ;;  %v1153_v62 = vadd.f32 %v1753_v57, %v712_v59 }
 0x15f   :  { %1229 = vst [vmem:[#allocation8 + $0xc0] sm:$0xff] %v1133_v41  ;;  %1252 = vst [vmem:[#allocation8 + $0x178] sm:$0xff] %v1156_v58 }
 0x160   :  { %1230 = vst [vmem:[#allocation8 + $0xc8] sm:$0xff] %v1134_v44  ;;  %v439_v48 = vpop.f32.mrb[18].mxu0  ;;  %1249 = vst [vmem:[#allocation8 + $0x160] sm:$0xff] %v1153_v62  ;;  %v1521_v0 = vpop.f32.mrb[16].mxu1 }
 0x161   :  { %v1136_v51 = vadd.f32 %v1745_v45, %v439_v48  ;;  %v441_v52 = vpop.f32.mrb[19].mxu0  ;;  %v1162_v2 = vadd.f32 %v1521_v0, %v1753_v57  ;;  %v722_v3 = vpop.f32.mrb[17].mxu1 }
 0x162   :  { %v1137_v54 = vadd.f32 %v1747_v46, %v441_v52  ;;  %v1159_v6 = vadd.f32 %v1753_v57, %v722_v3 }
 0x163   :  { %1232 = vst [vmem:[#allocation8 + $0xd8] sm:$0xff] %v1136_v51  ;;  %1258 = vst [vmem:[#allocation8 + $0x1a8] sm:$0xff] %v1162_v2 }
 0x164   :  { %1233 = vst [vmem:[#allocation8 + $0xe0] sm:$0xff] %v1137_v54  ;;  %v445_v56 = vpop.f32.mrb[20].mxu0  ;;  %1255 = vst [vmem:[#allocation8 + $0x190] sm:$0xff] %v1159_v6  ;;  %v1524_v8 = vpop.f32.mrb[18].mxu1 }
 0x165   :  { %v1139_v60 = vadd.f32 %v1745_v45, %v445_v56  ;;  %v447_v61 = vpop.f32.mrb[21].mxu0  ;;  %v1168_v10 = vadd.f32 %v1524_v8, %v1753_v57  ;;  %v732_v11 = vpop.f32.mrb[19].mxu1 }
 0x166   :  { %v1140_v63 = vadd.f32 %v1747_v46, %v447_v61  ;;  %v1165_v14 = vadd.f32 %v1753_v57, %v732_v11 }
 0x167   :  { %1235 = vst [vmem:[#allocation8 + $0xf0] sm:$0xff] %v1139_v60  ;;  %1264 = vst [vmem:[#allocation8 + $0x1d8] sm:$0xff] %v1168_v10 }
 0x168   :  { %1236 = vst [vmem:[#allocation8 + $0xf8] sm:$0xff] %v1140_v63  ;;  %v451_v1 = vpop.f32.mrb[22].mxu0  ;;  %1261 = vst [vmem:[#allocation8 + $0x1c0] sm:$0xff] %v1165_v14  ;;  %v1527_v16 = vpop.f32.mrb[20].mxu1 }
 0x169   :  { %v1142_v4 = vadd.f32 %v1745_v45, %v451_v1  ;;  %v453_v5 = vpop.f32.mrb[23].mxu0  ;;  %v1174_v18 = vadd.f32 %v1527_v16, %v1753_v57  ;;  %v742_v19 = vpop.f32.mrb[21].mxu1 }
 0x16a   :  { %v1143_v7 = vadd.f32 %v1747_v46, %v453_v5  ;;  %v1171_v22 = vadd.f32 %v1753_v57, %v742_v19 }
 0x16b   :  { %1238 = vst [vmem:[#allocation8 + $0x108] sm:$0xff] %v1142_v4  ;;  %1270 = vst [vmem:[#allocation8 + $0x208] sm:$0xff] %v1174_v18 }
 0x16c   :  { %1239 = vst [vmem:[#allocation8 + $0x110] sm:$0xff] %v1143_v7  ;;  %v457_v9 = vpop.f32.mrb[24].mxu0  ;;  %1267 = vst [vmem:[#allocation8 + $0x1f0] sm:$0xff] %v1171_v22  ;;  %v1530_v24 = vpop.f32.mrb[22].mxu1 }
 0x16d   :  { %v1145_v12 = vadd.f32 %v1745_v45, %v457_v9  ;;  %v459_v13 = vpop.f32.mrb[25].mxu0  ;;  %v1180_v26 = vadd.f32 %v1530_v24, %v1753_v57  ;;  %v752_v27 = vpop.f32.mrb[23].mxu1 }
 0x16e   :  { %v1146_v15 = vadd.f32 %v1747_v46, %v459_v13  ;;  %v1177_v30 = vadd.f32 %v1753_v57, %v752_v27 }
 0x16f   :  { %1241 = vst [vmem:[#allocation8 + $0x120] sm:$0xff] %v1145_v12  ;;  %1276 = vst [vmem:[#allocation8 + $0x238] sm:$0xff] %v1180_v26 }
 0x170   :  { %1242 = vst [vmem:[#allocation8 + $0x128] sm:$0xff] %v1146_v15  ;;  %v463_v17 = vpop.f32.mrb[26].mxu0  ;;  %1273 = vst [vmem:[#allocation8 + $0x220] sm:$0xff] %v1177_v30  ;;  %v1533_v32 = vpop.f32.mrb[24].mxu1 }
 0x171   :  { %v1148_v20 = vadd.f32 %v1745_v45, %v463_v17  ;;  %v465_v21 = vpop.f32.mrb[27].mxu0  ;;  %v1186_v34 = vadd.f32 %v1533_v32, %v1753_v57  ;;  %v762_v35 = vpop.f32.mrb[25].mxu1 }
 0x172   :  { %v1149_v23 = vadd.f32 %v1747_v46, %v465_v21  ;;  %v1183_v38 = vadd.f32 %v1753_v57, %v762_v35 }
 0x173   :  { %1244 = vst [vmem:[#allocation8 + $0x138] sm:$0xff] %v1148_v20  ;;  %1282 = vst [vmem:[#allocation8 + $0x268] sm:$0xff] %v1186_v34 }
 0x174   :  { %1245 = vst [vmem:[#allocation8 + $0x140] sm:$0xff] %v1149_v23  ;;  %v469_v25 = vpop.f32.mrb[28].mxu0  ;;  %1279 = vst [vmem:[#allocation8 + $0x250] sm:$0xff] %v1183_v38  ;;  %v1536_v40 = vpop.f32.mrb[26].mxu1 }
 0x175   :  { %v1151_v28 = vadd.f32 %v1745_v45, %v469_v25  ;;  %v471_v29 = vpop.f32.mrb[29].mxu0  ;;  %v1192_v42 = vadd.f32 %v1536_v40, %v1753_v57  ;;  %v772_v43 = vpop.f32.mrb[27].mxu1 }
 0x176   :  { %v1152_v31 = vadd.f32 %v1747_v46, %v471_v29  ;;  %v1189_v48 = vadd.f32 %v1753_v57, %v772_v43 }
 0x177   :  { %1247 = vst [vmem:[#allocation8 + $0x150] sm:$0xff] %v1151_v28  ;;  %1288 = vst [vmem:[#allocation8 + $0x298] sm:$0xff] %v1192_v42 }
 0x178   :  { %1248 = vst [vmem:[#allocation8 + $0x158] sm:$0xff] %v1152_v31  ;;  %v475_v33 = vpop.f32.mrb[30].mxu0  ;;  %1285 = vst [vmem:[#allocation8 + $0x280] sm:$0xff] %v1189_v48  ;;  %v1539_v50 = vpop.f32.mrb[28].mxu1 }
 0x179   :  { %v1154_v36 = vadd.f32 %v1745_v45, %v475_v33  ;;  %v477_v37 = vpop.f32.mrb[31].mxu0  ;;  %v1198_v52 = vadd.f32 %v1539_v50, %v1753_v57  ;;  %v782_v53 = vpop.f32.mrb[29].mxu1 }
 0x17a   :  { %v1155_v39 = vadd.f32 %v1747_v46, %v477_v37  ;;  %v1195_v56 = vadd.f32 %v1753_v57, %v782_v53 }
 0x17b   :  { %1250 = vst [vmem:[#allocation8 + $0x168] sm:$0xff] %v1154_v36  ;;  %1294 = vst [vmem:[#allocation8 + $0x2c8] sm:$0xff] %v1198_v52 }
 0x17c   :  { %1251 = vst [vmem:[#allocation8 + $0x170] sm:$0xff] %v1155_v39  ;;  %v481_v41 = vpop.f32.mrb[32].mxu0  ;;  %1291 = vst [vmem:[#allocation8 + $0x2b0] sm:$0xff] %v1195_v56  ;;  %v1542_v59 = vpop.f32.mrb[30].mxu1 }
 0x17d   :  { %v1157_v44 = vadd.f32 %v1745_v45, %v481_v41  ;;  %v483_v47 = vpop.f32.mrb[33].mxu0  ;;  %v1204_v61 = vadd.f32 %v1542_v59, %v1753_v57  ;;  %v792_v62 = vpop.f32.mrb[31].mxu1 }
 0x17e   :  { %v1158_v49 = vadd.f32 %v1747_v46, %v483_v47  ;;  %v1201_v1 = vadd.f32 %v1753_v57, %v792_v62 }
 0x17f   :  { %1253 = vst [vmem:[#allocation8 + $0x180] sm:$0xff] %v1157_v44  ;;  %1300 = vst [vmem:[#allocation8 + $0x2f8] sm:$0xff] %v1204_v61 }
 0x180   :  { %1254 = vst [vmem:[#allocation8 + $0x188] sm:$0xff] %v1158_v49  ;;  %v487_v51 = vpop.f32.mrb[34].mxu0  ;;  %1297 = vst [vmem:[#allocation8 + $0x2e0] sm:$0xff] %v1201_v1 }
 0x181   :  { %v1160_v54 = vadd.f32 %v1745_v45, %v487_v51  ;;  %v489_v55 = vpop.f32.mrb[35].mxu0 }
 0x182   :  { %v1161_v58 = vadd.f32 %v1747_v46, %v489_v55 }
 0x183   :  { %1256 = vst [vmem:[#allocation8 + $0x198] sm:$0xff] %v1160_v54 }
 0x184   :  { %1257 = vst [vmem:[#allocation8 + $0x1a0] sm:$0xff] %v1161_v58  ;;  %v493_v60 = vpop.f32.mrb[36].mxu0 }
 0x185   :  { %v1163_v63 = vadd.f32 %v1745_v45, %v493_v60  ;;  %v495_v0 = vpop.f32.mrb[37].mxu0 }
 0x186   :  { %v1164_v2 = vadd.f32 %v1747_v46, %v495_v0 }
 0x187   :  { %1259 = vst [vmem:[#allocation8 + $0x1b0] sm:$0xff] %v1163_v63 }
 0x188   :  { %1260 = vst [vmem:[#allocation8 + $0x1b8] sm:$0xff] %v1164_v2  ;;  %v499_v3 = vpop.f32.mrb[38].mxu0 }
 0x189   :  { %v1166_v4 = vadd.f32 %v1745_v45, %v499_v3  ;;  %v501_v5 = vpop.f32.mrb[39].mxu0 }
 0x18a   :  { %v1167_v6 = vadd.f32 %v1747_v46, %v501_v5 }
 0x18b   :  { %1262 = vst [vmem:[#allocation8 + $0x1c8] sm:$0xff] %v1166_v4 }
 0x18c   :  { %1263 = vst [vmem:[#allocation8 + $0x1d0] sm:$0xff] %v1167_v6  ;;  %v505_v7 = vpop.f32.mrb[40].mxu0 }
 0x18d   :  { %v1169_v8 = vadd.f32 %v1745_v45, %v505_v7  ;;  %v507_v9 = vpop.f32.mrb[41].mxu0 }
 0x18e   :  { %v1170_v57 = vadd.f32 %v1747_v46, %v507_v9 }
 0x18f   :  { %1265 = vst [vmem:[#allocation8 + $0x1e0] sm:$0xff] %v1169_v8 }
 0x190   :  { %1266 = vst [vmem:[#allocation8 + $0x1e8] sm:$0xff] %v1170_v57  ;;  %v511_v10 = vpop.f32.mrb[42].mxu0 }
 0x191   :  { %v1172_v11 = vadd.f32 %v1745_v45, %v511_v10  ;;  %v513_v12 = vpop.f32.mrb[43].mxu0 }
 0x192   :  { %v1173_v13 = vadd.f32 %v1747_v46, %v513_v12 }
 0x193   :  { %1268 = vst [vmem:[#allocation8 + $0x1f8] sm:$0xff] %v1172_v11 }
 0x194   :  { %1269 = vst [vmem:[#allocation8 + $0x200] sm:$0xff] %v1173_v13  ;;  %v517_v14 = vpop.f32.mrb[44].mxu0 }
 0x195   :  { %v1175_v15 = vadd.f32 %v1745_v45, %v517_v14  ;;  %v519_v16 = vpop.f32.mrb[45].mxu0 }
 0x196   :  { %v1176_v17 = vadd.f32 %v1747_v46, %v519_v16 }
 0x197   :  { %1271 = vst [vmem:[#allocation8 + $0x210] sm:$0xff] %v1175_v15 }
 0x198   :  { %1272 = vst [vmem:[#allocation8 + $0x218] sm:$0xff] %v1176_v17  ;;  %v523_v18 = vpop.f32.mrb[46].mxu0 }
 0x199   :  { %v1178_v19 = vadd.f32 %v1745_v45, %v523_v18  ;;  %v525_v20 = vpop.f32.mrb[47].mxu0 }
 0x19a   :  { %v1179_v21 = vadd.f32 %v1747_v46, %v525_v20 }
 0x19b   :  { %1274 = vst [vmem:[#allocation8 + $0x228] sm:$0xff] %v1178_v19 }
 0x19c   :  { %1275 = vst [vmem:[#allocation8 + $0x230] sm:$0xff] %v1179_v21  ;;  %v529_v22 = vpop.f32.mrb[48].mxu0 }
 0x19d   :  { %v1181_v23 = vadd.f32 %v1745_v45, %v529_v22  ;;  %v531_v24 = vpop.f32.mrb[49].mxu0 }
 0x19e   :  { %v1182_v25 = vadd.f32 %v1747_v46, %v531_v24 }
 0x19f   :  { %1277 = vst [vmem:[#allocation8 + $0x240] sm:$0xff] %v1181_v23 }
 0x1a0   :  { %1278 = vst [vmem:[#allocation8 + $0x248] sm:$0xff] %v1182_v25  ;;  %v535_v26 = vpop.f32.mrb[50].mxu0 }
 0x1a1   :  { %v1184_v27 = vadd.f32 %v1745_v45, %v535_v26  ;;  %v537_v28 = vpop.f32.mrb[51].mxu0 }
 0x1a2   :  { %v1185_v29 = vadd.f32 %v1747_v46, %v537_v28 }
 0x1a3   :  { %1280 = vst [vmem:[#allocation8 + $0x258] sm:$0xff] %v1184_v27 }
 0x1a4   :  { %1281 = vst [vmem:[#allocation8 + $0x260] sm:$0xff] %v1185_v29  ;;  %v541_v30 = vpop.f32.mrb[52].mxu0 }
 0x1a5   :  { %v1187_v31 = vadd.f32 %v1745_v45, %v541_v30  ;;  %v543_v32 = vpop.f32.mrb[53].mxu0 }
 0x1a6   :  { %v1188_v33 = vadd.f32 %v1747_v46, %v543_v32 }
 0x1a7   :  { %1283 = vst [vmem:[#allocation8 + $0x270] sm:$0xff] %v1187_v31 }
 0x1a8   :  { %1284 = vst [vmem:[#allocation8 + $0x278] sm:$0xff] %v1188_v33  ;;  %v547_v34 = vpop.f32.mrb[54].mxu0 }
 0x1a9   :  { %v1190_v35 = vadd.f32 %v1745_v45, %v547_v34  ;;  %v549_v36 = vpop.f32.mrb[55].mxu0 }
 0x1aa   :  { %v1191_v37 = vadd.f32 %v1747_v46, %v549_v36 }
 0x1ab   :  { %1286 = vst [vmem:[#allocation8 + $0x288] sm:$0xff] %v1190_v35 }
 0x1ac   :  { %1287 = vst [vmem:[#allocation8 + $0x290] sm:$0xff] %v1191_v37  ;;  %v553_v38 = vpop.f32.mrb[56].mxu0 }
 0x1ad   :  { %v1193_v39 = vadd.f32 %v1745_v45, %v553_v38  ;;  %v555_v40 = vpop.f32.mrb[57].mxu0 }
 0x1ae   :  { %v1194_v41 = vadd.f32 %v1747_v46, %v555_v40 }
 0x1af   :  { %1289 = vst [vmem:[#allocation8 + $0x2a0] sm:$0xff] %v1193_v39 }
 0x1b0   :  { %1290 = vst [vmem:[#allocation8 + $0x2a8] sm:$0xff] %v1194_v41  ;;  %v559_v42 = vpop.f32.mrb[58].mxu0 }
 0x1b1   :  { %v1196_v43 = vadd.f32 %v1745_v45, %v559_v42  ;;  %v561_v44 = vpop.f32.mrb[59].mxu0 }
 0x1b2   :  { %v1197_v47 = vadd.f32 %v1747_v46, %v561_v44 }
 0x1b3   :  { %1292 = vst [vmem:[#allocation8 + $0x2b8] sm:$0xff] %v1196_v43 }
 0x1b4   :  { %1293 = vst [vmem:[#allocation8 + $0x2c0] sm:$0xff] %v1197_v47  ;;  %v565_v48 = vpop.f32.mrb[60].mxu0 }
 0x1b5   :  { %v1199_v49 = vadd.f32 %v1745_v45, %v565_v48  ;;  %v567_v50 = vpop.f32.mrb[61].mxu0 }
 0x1b6   :  { %v1200_v51 = vadd.f32 %v1747_v46, %v567_v50 }
 0x1b7   :  { %1295 = vst [vmem:[#allocation8 + $0x2d0] sm:$0xff] %v1199_v49 }
 0x1b8   :  { %1296 = vst [vmem:[#allocation8 + $0x2d8] sm:$0xff] %v1200_v51  ;;  %v571_v52 = vpop.f32.mrb[62].mxu0 }
 0x1b9   :  { %v1202_v53 = vadd.f32 %v1745_v45, %v571_v52  ;;  %v573_v54 = vpop.f32.mrb[63].mxu0 }
 0x1ba   :  { %v1203_v55 = vadd.f32 %v1747_v46, %v573_v54 }
 0x1bb   :  { %1298 = vst [vmem:[#allocation8 + $0x2e8] sm:$0xff] %v1202_v53 }
 0x1bc   :  { %1299 = vst [vmem:[#allocation8 + $0x2f0] sm:$0xff] %v1203_v55 }
 0x1bd   :  { %1669 = shalt.err (!%p1666_p6)
}
 0x1be   :  { %s1670_s15 = scalar_lea.hbm %s1862_s3, 12288 }
 0x1bf   :  { %p1671_p7 = scmp.ne.s32.totalorder %s1862_s3, %s1670_s15  ;;  %p1674_p8 = scmp.lt.u32.totalorder %s1670_s15, %s1862_s3 }
 0x1c1   :  { %p1676_p9 = pnand %p1674_p8, %p1671_p7 }
 0x1c3   :  { %1679 = shalt.err (!%p1676_p9)
}
 0x1c4   :  { %s1691_s20 = smov 384   ;;  %s1692_s21 = smov 24  }
 0x1c5   :  { %1312 = dma.vmem_to_hbm [thread:$0]  %s1307_s11, 12288, %s1862_s3, [#allocation5], %s1691_s20, %s1691_s20, %s1692_s21  }
 0x1c6   :  { %1684 = dma.done.wait [#allocation5], 12288  }
 0x1c7   :  { %1685 = vsyncadd [#allocation5], 4294955008 }
 0x1c8   :  { %1316 = vsyncpa [#allocation4], 1 }
 0x1c9   :  { %1317 = vsyncpa [#allocation7], 1 }
 0x1ca   :  { %1318 = vsyncpa [#allocation5], 1 }

</bundles_post_ra>
